<compile_context>
chip_gen: v5e
topology: v5e:2x2
jax: 0.10.0
libtpu: 0.0.40
codegen_flags: <defaults>
</compile_context>

<pallas_src>
import math
from functools import partial
from math import ceil

import numpy as np
import jax
import jax.numpy as jnp
from jax.experimental import pallas as pl
from jax.experimental.pallas import tpu as pltpu

F_FEATURES = 8        # features
C_CONTEXT = 4         # context features
HIDDEN = (64, 64)     # MaskedMLP default hidden widths
TOTAL = 2             # shapes = [(), ()]  ->  sizes = [1, 1]
SLOPE = 1e-3          # MonotonicAffineTransform default slope
BATCH = 512
MAX_TM = 4096         # max batch-lane tile per grid step (only tiles huge batches)

_INV_LN_SLOPE = 1.0 / math.log(SLOPE)   # precomputed constant (negative)


# ----------------------------------------------------------------------------
# Mask construction (replicates zuko.nn.MaskedMLP mask derivation, host-side)
# ----------------------------------------------------------------------------
def build_masks(features, context, hidden, total, passes=None):
    if passes is None:
        passes = features
    passes = min(max(passes, 1), features)
    order = np.arange(features) // ceil(features / passes)

    in_order = np.concatenate([order, -np.ones(context, dtype=np.int64)])
    out_order = np.repeat(order, total)
    adjacency = out_order[:, None] > in_order[None, :]            # (total*F, F+C)

    a_unique, inverse = np.unique(adjacency, axis=0, return_inverse=True)
    inverse = inverse.reshape(-1)
    ai = a_unique.astype(np.int64)
    precedence = (ai @ ai.T) == ai.sum(-1)[None, :]                # (U, U)

    widths = list(hidden) + [adjacency.shape[0]]
    masks = []
    indices = None
    for i, width in enumerate(widths):
        mask = a_unique if i == 0 else precedence[:, indices]
        if i < len(widths) - 1:
            reachable = np.nonzero(mask.sum(-1))[0]
            indices = reachable[np.arange(width) % len(reachable)]
            mask = mask[indices]
        else:
            mask = mask[inverse]
        masks.append(mask.astype(np.float32))                      # (out, in)
    return masks


def init_params(key, masks):
    """nn.Linear-style uniform init, deterministic. Masks baked into the
    weights (host-side); weights stored (out, in)."""
    params = []
    for m in masks:
        out_f, in_f = m.shape
        key, kw, kb = jax.random.split(key, 3)
        bound = 1.0 / math.sqrt(in_f)
        w = jax.random.uniform(kw, (out_f, in_f), jnp.float32, -bound, bound)
        b = jax.random.uniform(kb, (out_f,), jnp.float32, -bound, bound)
        params.append((w * jnp.asarray(m), b))        # mask baked in, (out, in)
    return params


def prepare_kernel_params(params, features, total):
    """Kernel-side layout prep (all free, host-side):
      * split layer-1 weight columns into x-half and context-half,
      * permute last-layer ROWS so shift occupies [0:F) and scale [F:2F)
        (de-interleaves phi without any in-kernel selection),
      * biases reshaped to (out, 1) for lane-broadcast in the transposed layout."""
    (w1, b1), (w2, b2), (w3, b3) = params
    w1x, w1y = w1[:, :features], w1[:, features:]                  # (64,F),(64,C)
    assert w3.shape[0] == features * total
    perm = np.arange(features * total).reshape(features, total).T.reshape(-1)
    w3p = w3[perm, :]                                              # (2F, 64)
    b3p = b3[perm]
    return (w1x, w1y, b1.reshape(-1, 1),
            w2, b2.reshape(-1, 1),
            w3p, b3p.reshape(-1, 1))


# ----------------------------------------------------------------------------
# Pallas kernel: masked MLP + affine transform, one lane-dense batch tile
# Layout: activations are (channels, batch); batch rides the 128-lane axis.
# ----------------------------------------------------------------------------
def _maf_kernel(x_ref, y_ref,
                w1x_ref, w1y_ref, b1_ref,
                w2_ref, b2_ref,
                w3_ref, b3_ref,
                z_ref, *, features):
    x = x_ref[...]                                                   # (F, TM)
    # Layer 1: W1 @ concat(x, y)  ==  W1x @ x + W1y @ y
    h = (jnp.dot(w1x_ref[...], x, preferred_element_type=jnp.float32)
         + jnp.dot(w1y_ref[...], y_ref[...], preferred_element_type=jnp.float32)
         + b1_ref[...])                                              # (64, TM)
    h = jnp.maximum(h, 0.0)
    h = jnp.dot(w2_ref[...], h, preferred_element_type=jnp.float32) + b2_ref[...]
    h = jnp.maximum(h, 0.0)
    phi = jnp.dot(w3_ref[...], h, preferred_element_type=jnp.float32) + b3_ref[...]

    # Rows were permuted host-side: [ shift ; scale ]  (slice at sublane tile 8)
    shift = phi[:features, :]                                        # (F, TM)
    scale = phi[features:, :]                                        # (F, TM)

    # soft_clip(s) = s / (1 + |s / ln(slope)|)  — exact divide (matches zuko)
    denom = 1.0 + jnp.abs(scale * jnp.float32(_INV_LN_SLOPE))
    log_scale = scale / denom
    z_ref[...] = x * jnp.exp(log_scale) + shift                      # lane-dense


def maf_forward(x, y, kernel_params, max_tm=MAX_TM):
    """z = MaskedAutoregressiveTransform(...)(y)(x), batched over rows."""
    b, features = x.shape
    context = y.shape[1]
    w1x, w1y, b1, w2, b2, w3, b3 = kernel_params

    # Transpose so the batch is the lane (last) axis; kernel output transposed back.
    xt = x.T                                                         # (F, B)
    yt = y.T                                                         # (C, B)

    # Single tile whenever the batch fits (per-grid-step overhead ~0.35 us);
    # only very large batches get tiled.
    bp = -(-b // 128) * 128
    if bp <= max_tm:
        tm = bp
    else:
        tm = max_tm
        bp = -(-b // tm) * tm
    if bp != b:
        # TODO(synk): for huge ragged batches a masked last-tile store would
        # avoid this pad copy; not needed at demo sizes (512 % 128 == 0).
        xt = jnp.pad(xt, ((0, 0), (0, bp - b)))
        yt = jnp.pad(yt, ((0, 0), (0, bp - b)))
    grid = (bp // tm,)

    def resident(arr):                                    # VMEM-resident weights
        return pl.BlockSpec(arr.shape, lambda i: (0, 0))

    zt = pl.pallas_call(
        partial(_maf_kernel, features=features),
        out_shape=jax.ShapeDtypeStruct((features, bp), jnp.float32),
        grid_spec=pltpu.PrefetchScalarGridSpec(
            num_scalar_prefetch=0,
            grid=grid,
            in_specs=[
                pl.BlockSpec((features, tm), lambda i: (0, i)),   # x tile (lane-dense)
                pl.BlockSpec((context, tm), lambda i: (0, i)),    # y tile (lane-dense)
                resident(w1x), resident(w1y), resident(b1),
                resident(w2), resident(b2),
                resident(w3), resident(b3),
            ],
            out_specs=pl.BlockSpec((features, tm), lambda i: (0, i)),
        ),
        compiler_params=pltpu.CompilerParams(
            dimension_semantics=("arbitrary",) if grid[0] == 1 else ("parallel",)),
    )(xt, yt, w1x, w1y, b1, w2, b2, w3, b3)
    return zt[:, :b].T


# ----------------------------------------------------------------------------
# Pure-JAX reference for verification (canonical (out,in) params)
# ----------------------------------------------------------------------------
def maf_reference(x, y, params):
    h = jnp.concatenate([x, y], axis=-1)
    for i, (w, b) in enumerate(params):
        h = h @ w.T + b
        if i < len(params) - 1:
            h = jnp.maximum(h, 0.0)
    phi = h.reshape(x.shape[0], x.shape[1], TOTAL)
    shift, scale = phi[..., 0], phi[..., 1]
    log_scale = scale / (1.0 + jnp.abs(scale / math.log(SLOPE)))
    return x * jnp.exp(log_scale) + shift


if __name__ == "__main__":
    key = jax.random.PRNGKey(0)
    kx, ky, kp = jax.random.split(key, 3)

    x = jax.random.normal(kx, (BATCH, F_FEATURES), jnp.float32)
    y = jax.random.normal(ky, (BATCH, C_CONTEXT), jnp.float32)

    masks = build_masks(F_FEATURES, C_CONTEXT, HIDDEN, TOTAL)
    params = init_params(kp, masks)                       # masks baked in
    kparams = prepare_kernel_params(params, F_FEATURES, TOTAL)

    z = maf_forward(x, y, kparams)
    jax.block_until_ready(z)

    z_ref = maf_reference(x, y, params)
    # Exact divide in soft_clip (no approx reciprocal); tolerance covers MXU
    # f32-accumulation differences only.
    np.testing.assert_allclose(np.asarray(z), np.asarray(z_ref),
                               rtol=5e-3, atol=5e-3)

    # TODO(synk): forward() actually returns a lazy Transform object; here we
    # materialize t(y)(x) (the autoregressive forward call), which is the
    # numerical hot path. The multi-pass inverse (.inv) is not implemented.
    print("KERNEL_OK")
</pallas_src>

<mosaic_0001>
module attributes {stable_mosaic.version = 11 : i64} {
  func.func @_maf_kernel(%arg0: i32, %arg1: memref<8x512xf32, #tpu.memory_space<vmem>>, %arg2: memref<4x512xf32, #tpu.memory_space<vmem>>, %arg3: memref<64x8xf32, #tpu.memory_space<vmem>>, %arg4: memref<64x4xf32, #tpu.memory_space<vmem>>, %arg5: memref<64x1xf32, #tpu.memory_space<vmem>>, %arg6: memref<64x64xf32, #tpu.memory_space<vmem>>, %arg7: memref<64x1xf32, #tpu.memory_space<vmem>>, %arg8: memref<16x64xf32, #tpu.memory_space<vmem>>, %arg9: memref<16x1xf32, #tpu.memory_space<vmem>>, %arg10: memref<8x512xf32, #tpu.memory_space<vmem>>) attributes {dimension_semantics = [#tpu.dimension_semantics<arbitrary>], iteration_bounds = array<i64: 1>, scalar_prefetch = 0 : i64, scratch_operands = 0 : i64, tpu.core_type = #tpu.core_type<tc>, window_params = [{transform_indices = @transform_0, window_bounds = array<i64: 8, 512>}, {transform_indices = @transform_1, window_bounds = array<i64: 4, 512>}, {pipeline_mode = #tpu.pipeline_mode<synchronous>, transform_indices = @transform_2, window_bounds = array<i64: 64, 8>}, {pipeline_mode = #tpu.pipeline_mode<synchronous>, transform_indices = @transform_3, window_bounds = array<i64: 64, 4>}, {pipeline_mode = #tpu.pipeline_mode<synchronous>, transform_indices = @transform_4, window_bounds = array<i64: 64, 1>}, {pipeline_mode = #tpu.pipeline_mode<synchronous>, transform_indices = @transform_5, window_bounds = array<i64: 64, 64>}, {pipeline_mode = #tpu.pipeline_mode<synchronous>, transform_indices = @transform_6, window_bounds = array<i64: 64, 1>}, {pipeline_mode = #tpu.pipeline_mode<synchronous>, transform_indices = @transform_7, window_bounds = array<i64: 16, 64>}, {pipeline_mode = #tpu.pipeline_mode<synchronous>, transform_indices = @transform_8, window_bounds = array<i64: 16, 1>}, {transform_indices = @transform_9, window_bounds = array<i64: 8, 512>}]} {
    %c0 = arith.constant 0 : index
    %c0_0 = arith.constant 0 : index
    %0 = vector.load %arg1[%c0, %c0_0] : memref<8x512xf32, #tpu.memory_space<vmem>>, vector<8x512xf32>
    %c0_1 = arith.constant 0 : index
    %c0_2 = arith.constant 0 : index
    %1 = vector.load %arg3[%c0_1, %c0_2] : memref<64x8xf32, #tpu.memory_space<vmem>>, vector<64x8xf32>
    %cst = arith.constant dense<0.000000e+00> : vector<64x512xf32>
    %2 = tpu.matmul %1, %0, %cst {dimension_numbers = #tpu.dot_dimension_numbers<[1], [0], [0], [1], [0, 0, 1, 1], [], []>} : vector<64x8xf32>, vector<8x512xf32>, vector<64x512xf32> -> vector<64x512xf32>
    %c0_3 = arith.constant 0 : index
    %c0_4 = arith.constant 0 : index
    %3 = vector.load %arg4[%c0_3, %c0_4] : memref<64x4xf32, #tpu.memory_space<vmem>>, vector<64x4xf32>
    %c0_5 = arith.constant 0 : index
    %c0_6 = arith.constant 0 : index
    %4 = vector.load %arg2[%c0_5, %c0_6] : memref<4x512xf32, #tpu.memory_space<vmem>>, vector<4x512xf32>
    %cst_7 = arith.constant dense<0.000000e+00> : vector<64x512xf32>
    %5 = tpu.matmul %3, %4, %cst_7 {dimension_numbers = #tpu.dot_dimension_numbers<[1], [0], [0], [1], [0, 0, 1, 1], [], []>} : vector<64x4xf32>, vector<4x512xf32>, vector<64x512xf32> -> vector<64x512xf32>
    %6 = arith.addf %2, %5 : vector<64x512xf32>
    %c0_8 = arith.constant 0 : index
    %c0_9 = arith.constant 0 : index
    %7 = vector.load %arg5[%c0_8, %c0_9] : memref<64x1xf32, #tpu.memory_space<vmem>>, vector<64x1xf32>
    %8 = vector.broadcast %7 : vector<64x1xf32> to vector<64x512xf32>
    %9 = arith.addf %6, %8 : vector<64x512xf32>
    %cst_10 = arith.constant 0.000000e+00 : f32
    %10 = vector.broadcast %cst_10 : f32 to vector<64x512xf32>
    %11 = arith.maximumf %9, %10 : vector<64x512xf32>
    %c0_11 = arith.constant 0 : index
    %c0_12 = arith.constant 0 : index
    %12 = vector.load %arg6[%c0_11, %c0_12] : memref<64x64xf32, #tpu.memory_space<vmem>>, vector<64x64xf32>
    %cst_13 = arith.constant dense<0.000000e+00> : vector<64x512xf32>
    %13 = tpu.matmul %12, %11, %cst_13 {dimension_numbers = #tpu.dot_dimension_numbers<[1], [0], [0], [1], [0, 0, 1, 1], [], []>} : vector<64x64xf32>, vector<64x512xf32>, vector<64x512xf32> -> vector<64x512xf32>
    %c0_14 = arith.constant 0 : index
    %c0_15 = arith.constant 0 : index
    %14 = vector.load %arg7[%c0_14, %c0_15] : memref<64x1xf32, #tpu.memory_space<vmem>>, vector<64x1xf32>
    %15 = vector.broadcast %14 : vector<64x1xf32> to vector<64x512xf32>
    %16 = arith.addf %13, %15 : vector<64x512xf32>
    %cst_16 = arith.constant 0.000000e+00 : f32
    %17 = vector.broadcast %cst_16 : f32 to vector<64x512xf32>
    %18 = arith.maximumf %16, %17 : vector<64x512xf32>
    %c0_17 = arith.constant 0 : index
    %c0_18 = arith.constant 0 : index
    %19 = vector.load %arg8[%c0_17, %c0_18] : memref<16x64xf32, #tpu.memory_space<vmem>>, vector<16x64xf32>
    %cst_19 = arith.constant dense<0.000000e+00> : vector<16x512xf32>
    %20 = tpu.matmul %19, %18, %cst_19 {dimension_numbers = #tpu.dot_dimension_numbers<[1], [0], [0], [1], [0, 0, 1, 1], [], []>} : vector<16x64xf32>, vector<64x512xf32>, vector<16x512xf32> -> vector<16x512xf32>
    %c0_20 = arith.constant 0 : index
    %c0_21 = arith.constant 0 : index
    %21 = vector.load %arg9[%c0_20, %c0_21] : memref<16x1xf32, #tpu.memory_space<vmem>>, vector<16x1xf32>
    %22 = vector.broadcast %21 : vector<16x1xf32> to vector<16x512xf32>
    %23 = arith.addf %20, %22 : vector<16x512xf32>
    %24 = vector.extract_strided_slice %23 {offsets = [0, 0], sizes = [8, 512], strides = [1, 1]} : vector<16x512xf32> to vector<8x512xf32>
    %25 = vector.extract_strided_slice %23 {offsets = [8, 0], sizes = [8, 512], strides = [1, 1]} : vector<16x512xf32> to vector<8x512xf32>
    %cst_22 = arith.constant -0.144764826 : f32
    %26 = vector.broadcast %cst_22 : f32 to vector<8x512xf32>
    %27 = arith.mulf %25, %26 : vector<8x512xf32>
    %28 = math.absf %27 : vector<8x512xf32>
    %cst_23 = arith.constant 1.000000e+00 : f32
    %29 = vector.broadcast %cst_23 : f32 to vector<8x512xf32>
    %30 = arith.addf %29, %28 : vector<8x512xf32>
    %31 = arith.divf %25, %30 : vector<8x512xf32>
    %32 = math.exp %31 : vector<8x512xf32>
    %33 = arith.mulf %0, %32 : vector<8x512xf32>
    %34 = arith.addf %33, %24 : vector<8x512xf32>
    %c0_24 = arith.constant 0 : index
    %c0_25 = arith.constant 0 : index
    %35 = vector.load %arg10[%c0_24, %c0_25] : memref<8x512xf32, #tpu.memory_space<vmem>>, vector<8x512xf32>
    tpu.vector_store %arg10[%c0_24, %c0_25], %34 {strides = array<i32>} : memref<8x512xf32, #tpu.memory_space<vmem>>, vector<8x512xf32>,
    return
  }
  func.func @transform_0(%arg0: i32) -> (i32, i32) {
    %c0_i32 = arith.constant 0 : i32
    %c0_i32_0 = arith.constant 0 : i32
    return %c0_i32, %arg0 : i32, i32
  }
  func.func @transform_1(%arg0: i32) -> (i32, i32) {
    %c0_i32 = arith.constant 0 : i32
    %c0_i32_0 = arith.constant 0 : i32
    return %c0_i32, %arg0 : i32, i32
  }
  func.func @transform_2(%arg0: i32) -> (i32, i32) {
    %c0_i32 = arith.constant 0 : i32
    %c0_i32_0 = arith.constant 0 : i32
    %c0_i32_1 = arith.constant 0 : i32
    return %c0_i32, %c0_i32_0 : i32, i32
  }
  func.func @transform_3(%arg0: i32) -> (i32, i32) {
    %c0_i32 = arith.constant 0 : i32
    %c0_i32_0 = arith.constant 0 : i32
    %c0_i32_1 = arith.constant 0 : i32
    return %c0_i32, %c0_i32_0 : i32, i32
  }
  func.func @transform_4(%arg0: i32) -> (i32, i32) {
    %c0_i32 = arith.constant 0 : i32
    %c0_i32_0 = arith.constant 0 : i32
    %c0_i32_1 = arith.constant 0 : i32
    return %c0_i32, %c0_i32_0 : i32, i32
  }
  func.func @transform_5(%arg0: i32) -> (i32, i32) {
    %c0_i32 = arith.constant 0 : i32
    %c0_i32_0 = arith.constant 0 : i32
    %c0_i32_1 = arith.constant 0 : i32
    return %c0_i32, %c0_i32_0 : i32, i32
  }
  func.func @transform_6(%arg0: i32) -> (i32, i32) {
    %c0_i32 = arith.constant 0 : i32
    %c0_i32_0 = arith.constant 0 : i32
    %c0_i32_1 = arith.constant 0 : i32
    return %c0_i32, %c0_i32_0 : i32, i32
  }
  func.func @transform_7(%arg0: i32) -> (i32, i32) {
    %c0_i32 = arith.constant 0 : i32
    %c0_i32_0 = arith.constant 0 : i32
    %c0_i32_1 = arith.constant 0 : i32
    return %c0_i32, %c0_i32_0 : i32, i32
  }
  func.func @transform_8(%arg0: i32) -> (i32, i32) {
    %c0_i32 = arith.constant 0 : i32
    %c0_i32_0 = arith.constant 0 : i32
    %c0_i32_1 = arith.constant 0 : i32
    return %c0_i32, %c0_i32_0 : i32, i32
  }
  func.func @transform_9(%arg0: i32) -> (i32, i32) {
    %c0_i32 = arith.constant 0 : i32
    %c0_i32_0 = arith.constant 0 : i32
    return %c0_i32, %arg0 : i32, i32
  }
}

</mosaic_0001>

<bundles_post_ra>
// kernel: tpu_custom_call.1
= control target key start
LH: loop header
LB: loop body
LE: loop exit
PB: predicated region body
PF: predicated region fallthrough
CT: control target
= control target key end

     0   :  { %s1782_s0 = inlined_call_operand.vmem [shape: f32[8,512], index: 0, kind: input, shape index: {}]   ;;  %s1783_s1 = inlined_call_operand.vmem [shape: f32[4,512], index: 1, kind: input, shape index: {}]   ;;  %s1784_s2 = inlined_call_operand.vmem [shape: f32[64,8], index: 2, kind: input, shape index: {}]   ;;  %s1785_s3 = inlined_call_operand.vmem [shape: f32[64,4], index: 3, kind: input, shape index: {}]   ;;  %s1786_s4 = inlined_call_operand.vmem [shape: f32[64,1], index: 4, kind: input, shape index: {}]   ;;  %s1787_s5 = inlined_call_operand.vmem [shape: f32[64,64], index: 5, kind: input, shape index: {}]   ;;  %s1788_s6 = inlined_call_operand.vmem [shape: f32[64,1], index: 6, kind: input, shape index: {}]   ;;  %s1789_s7 = inlined_call_operand.vmem [shape: f32[16,64], index: 7, kind: input, shape index: {}]   ;;  %s1790_s8 = inlined_call_operand.vmem [shape: f32[16,1], index: 8, kind: input, shape index: {}]   ;;  %s1791_s9 = inlined_call_operand.hbm [shape: f32[8,512], index: 9, kind: output, shape index: {}]  }
   0x1   :  { %v53_v0 = vld [vmem:[%s1783_s1] sm:$0xff]  ;;  %v54_v1 = vld [vmem:[%s1783_s1 + $0x8] sm:$0xff] }
   0x2   :  { %57 = vst [vmem:[#allocation1] ss:$2 sm:$0xff] %v53_v0 }
   0x3   :  { %59 = vst [vmem:[#allocation1 + $0x10] ss:$2 sm:$0xff] %v54_v1 }
   0x4   :  { %14 = vsyncpa [#allocation3], 0  ;;  %vm89_vm0 = vcmask 1043456   ;;  %v45_v2 = vld [vmem:[%s1785_s3] sm:$0xff]  ;;  %vm64_vm1 = vcmask 31744   ;;  %v46_v7 = vld [vmem:[%s1785_s3 + $0x8] sm:$0xff] }
   0x5   :  { %v47_v8 = vld [vmem:[%s1785_s3 + $0x10] sm:$0xff]  ;;  %v36_v10 = vld [vmem:[%s1782_s0 + $0x18] sm:$0xff]  ;;  %v456_v12 = vld [vmem:[%s1786_s4 + $0x28] sm:$0xff]  ;;  %v1219_v15 = vmov 0   ;;  %vm262_vm2 = vcmask 64512   ;;  %vm619_vm3 = vcmask 523264  }
   0x6   :  { %v35_v9 = vld [vmem:[%s1782_s0 + $0x10] sm:$0xff]  ;;  %v48_v11 = vld [vmem:[%s1785_s3 + $0x18] sm:$0xff]  ;;  %v33_v13 = vld [vmem:[%s1782_s0] sm:$0xff]  ;;  %1171 = vset.pattern.permute.xlu1 %v1219_v15  ;;  %1170 = vset.pattern.permute.xlu0 %v1219_v15  ;;  %s1220_s16 = smov [#allocation2]  }
   0x7   :  { %v34_v14 = vld [vmem:[%s1782_s0 + $0x8] sm:$0xff]  ;;  %486 = vperm.xlu1 %1171, %v456_v12   ;;  %1172 = vset.pattern.permute.xlu2 %v1219_v15  ;;  %v49_v16 = vld [vmem:[%s1785_s3 + $0x20] sm:$0xff]  ;;  %v458_v17 = vld [vmem:[%s1786_s4 + $0x38] sm:$0xff] }
   0x8   :  { %v455_v18 = vld [vmem:[%s1786_s4 + $0x20] sm:$0xff]  ;;  %496 = vperm.xlu0 %1170, %v458_v17   ;;  %v50_v19 = vld [vmem:[%s1785_s3 + $0x28] sm:$0xff]  ;;  %v457_v20 = vld [vmem:[%s1786_s4 + $0x30] sm:$0xff] }
   0x9   :  { %v60_v3 = vld.sshfl [vmem:[#allocation1] sm:$0xff pattern:$0x75316420]  ;;  %v61_v4 = vld.sshfl [vmem:[#allocation1 + $0x8] sm:$0xff pattern:$0x75316420] }
   0xa   :  { %1060 = vmatpush.msk.msra.mxu0 %vm89_vm0, %v60_v3  ;;  %1069 = vmatpush.msk.msra.mxu1 %vm89_vm0, %v61_v4  ;;  %v62_v5 = vld.sshfl [vmem:[#allocation1 + $0x10] sm:$0xff pattern:$0x75316420]  ;;  %v63_v6 = vld.sshfl [vmem:[#allocation1 + $0x18] sm:$0xff pattern:$0x75316420] }
   0xb   :  { %1078 = vmatpush.msk.msra.mxu2 %vm89_vm0, %v62_v5  ;;  %1087 = vmatpush.msk.msra.mxu3 %vm89_vm0, %v63_v6  ;;  %v451_v21 = vld [vmem:[%s1786_s4] sm:$0xff]  ;;  %v51_v22 = vld [vmem:[%s1785_s3 + $0x30] sm:$0xff]  ;;  %v452_v23 = vld [vmem:[%s1786_s4 + $0x8] sm:$0xff] }
   0xc   :  { %1061 = vmatmul.msk.f32.vlgmr.msra.gmra.mxu0 %vm64_vm1, %v45_v2  ;;  %1070 = vmatmul.msk.f32.vlgmr.msra.gmra.mxu1 %vm64_vm1, %v45_v2  ;;  %v52_v24 = vld [vmem:[%s1785_s3 + $0x38] sm:$0xff]  ;;  %v37_v25 = vld [vmem:[%s1784_s2] sm:$0xff]  ;;  %v38_v26 = vld [vmem:[%s1784_s2 + $0x8] sm:$0xff] }
   0xd   :  { %1079 = vmatmul.msk.f32.vlgmr.msra.gmra.mxu2 %vm64_vm1, %v45_v2  ;;  %1088 = vmatmul.msk.f32.vlgmr.msra.gmra.mxu3 %vm64_vm1, %v45_v2  ;;  %v454_v27 = vld [vmem:[%s1786_s4 + $0x18] sm:$0xff]  ;;  %v39_v28 = vld [vmem:[%s1784_s2 + $0x10] sm:$0xff]  ;;  %v576_v32 = vld [vmem:[%s1788_s6 + $0x28] sm:$0xff] }
   0xe   :  { %384 = vmatpush.msrb.mxu2 %v35_v9  ;;  %425 = vmatpush.msrb.mxu3 %v36_v10  ;;  %v453_v29 = vld [vmem:[%s1786_s4 + $0x10] sm:$0xff]  ;;  %v40_v31 = vld [vmem:[%s1784_s2 + $0x18] sm:$0xff]  ;;  %v41_v34 = vld [vmem:[%s1784_s2 + $0x20] sm:$0xff] }
   0xf   :  { %302 = vmatpush.msrb.mxu0 %v33_v13  ;;  %343 = vmatpush.msrb.mxu1 %v34_v14  ;;  %v577_v30 = vld [vmem:[%s1788_s6 + $0x30] sm:$0xff]  ;;  %v574_v33 = vld [vmem:[%s1788_s6 + $0x18] sm:$0xff]  ;;  %v571_v36 = vld [vmem:[%s1788_s6] sm:$0xff] }
  0x10   :  { %481 = vperm.xlu1 %1171, %v455_v18   ;;  %491 = vperm.xlu0 %1170, %v457_v20   ;;  %v573_v35 = vld [vmem:[%s1788_s6 + $0x10] sm:$0xff]  ;;  %v42_v37 = vld [vmem:[%s1784_s2 + $0x28] sm:$0xff]  ;;  %v578_v39 = vld [vmem:[%s1788_s6 + $0x38] sm:$0xff] }
  0x11   :  { %476 = vperm.xlu2 %1172, %v454_v27   ;;  %v843_v38 = vld [vmem:[%s1790_s8 + $0x8] sm:$0xff]  ;;  %v43_v40 = vld [vmem:[%s1784_s2 + $0x30] sm:$0xff]  ;;  %v575_v41 = vld [vmem:[%s1788_s6 + $0x20] sm:$0xff] }
  0x12   :  { %v44_v42 = vld [vmem:[%s1784_s2 + $0x38] sm:$0xff]  ;;  %v572_v43 = vld [vmem:[%s1788_s6 + $0x8] sm:$0xff]  ;;  %v842_v48 = vld [vmem:[%s1790_s8] sm:$0xff]  ;;  %s1049_s2 = sshll.u32 %s1220_s16, 4  ;;  %s1051_s8 = sshll.u32 %s1791_s9, 4  ;;  %s1050_s2 = int_to_ptr.vmem [resolvable:$true] %s1049_s2  ;;  %s1052_s8 = int_to_ptr.hbm [resolvable:$true] %s1051_s8 }
  0x14   :  { %1062 = vmatmul.msk.f32.gmra.mxu0 %vm64_vm1, %v46_v7  ;;  %1071 = vmatmul.msk.f32.gmra.mxu1 %vm64_vm1, %v46_v7 }
  0x15   :  { %1080 = vmatmul.msk.f32.gmra.mxu2 %vm64_vm1, %v46_v7  ;;  %1089 = vmatmul.msk.f32.gmra.mxu3 %vm64_vm1, %v46_v7 }
  0x18   :  { %461 = vperm.xlu1 %1171, %v451_v21   ;;  %466 = vperm.xlu0 %1170, %v452_v23  }
  0x19   :  { %471 = vperm.xlu2 %1172, %v453_v29  }
  0x1c   :  { %1063 = vmatmul.msk.f32.gmra.mxu0 %vm64_vm1, %v47_v8  ;;  %1072 = vmatmul.msk.f32.gmra.mxu1 %vm64_vm1, %v47_v8 }
  0x1d   :  { %1081 = vmatmul.msk.f32.gmra.mxu2 %vm64_vm1, %v47_v8  ;;  %1090 = vmatmul.msk.f32.gmra.mxu3 %vm64_vm1, %v47_v8 }
  0x20   :  { %611 = vperm.xlu0 %1170, %v577_v30   ;;  %606 = vperm.xlu1 %1171, %v576_v32  }
  0x21   :  { %616 = vperm.xlu2 %1172, %v578_v39  }
  0x24   :  { %1064 = vmatmul.msk.f32.gmra.mxu0 %vm64_vm1, %v48_v11  ;;  %1073 = vmatmul.msk.f32.gmra.mxu1 %vm64_vm1, %v48_v11 }
  0x25   :  { %1082 = vmatmul.msk.f32.gmra.mxu2 %vm64_vm1, %v48_v11  ;;  %1091 = vmatmul.msk.f32.gmra.mxu3 %vm64_vm1, %v48_v11 }
  0x28   :  { %596 = vperm.xlu0 %1170, %v574_v33   ;;  %591 = vperm.xlu1 %1171, %v573_v35  }
  0x29   :  { %601 = vperm.xlu2 %1172, %v575_v41  }
  0x2c   :  { %1065 = vmatmul.msk.f32.gmra.mxu0 %vm64_vm1, %v49_v16  ;;  %1074 = vmatmul.msk.f32.gmra.mxu1 %vm64_vm1, %v49_v16 }
  0x2d   :  { %1083 = vmatmul.msk.f32.gmra.mxu2 %vm64_vm1, %v49_v16  ;;  %1092 = vmatmul.msk.f32.gmra.mxu3 %vm64_vm1, %v49_v16 }
  0x30   :  { %581 = vperm.xlu0 %1170, %v571_v36   ;;  %851 = vperm.xlu1 %1171, %v843_v38  }
  0x31   :  { %586 = vperm.xlu2 %1172, %v572_v43  }
  0x34   :  { %1066 = vmatmul.msk.f32.gmra.mxu0 %vm64_vm1, %v50_v19  ;;  %1075 = vmatmul.msk.f32.gmra.mxu1 %vm64_vm1, %v50_v19 }
  0x35   :  { %1084 = vmatmul.msk.f32.gmra.mxu2 %vm64_vm1, %v50_v19  ;;  %1093 = vmatmul.msk.f32.gmra.mxu3 %vm64_vm1, %v50_v19 }
  0x39   :  { %846 = vperm.xlu2 %1172, %v842_v48  }
  0x3c   :  { %1067 = vmatmul.msk.f32.gmra.mxu0 %vm64_vm1, %v51_v22  ;;  %1076 = vmatmul.msk.f32.gmra.mxu1 %vm64_vm1, %v51_v22 }
  0x3d   :  { %1085 = vmatmul.msk.f32.gmra.mxu2 %vm64_vm1, %v51_v22  ;;  %1094 = vmatmul.msk.f32.gmra.mxu3 %vm64_vm1, %v51_v22 }
  0x44   :  { %1068 = vmatmul.msk.f32.gmra.mxu0 %vm64_vm1, %v52_v24  ;;  %1077 = vmatmul.msk.f32.gmra.mxu1 %vm64_vm1, %v52_v24 }
  0x45   :  { %1086 = vmatmul.msk.f32.gmra.mxu2 %vm64_vm1, %v52_v24  ;;  %1095 = vmatmul.msk.f32.gmra.mxu3 %vm64_vm1, %v52_v24 }
  0x4c   :  { %1096 = vmatmul.msk.f32.vlgmr.msrb.gmra.mxu0 %vm262_vm2, %v37_v25  ;;  %1104 = vmatmul.msk.f32.vlgmr.msrb.gmra.mxu1 %vm262_vm2, %v37_v25 }
  0x4d   :  { %1112 = vmatmul.msk.f32.vlgmr.msrb.gmra.mxu2 %vm262_vm2, %v37_v25  ;;  %1120 = vmatmul.msk.f32.vlgmr.msrb.gmra.mxu3 %vm262_vm2, %v37_v25 }
  0x54   :  { %1097 = vmatmul.msk.f32.gmra.mxu0 %vm262_vm2, %v38_v26  ;;  %1105 = vmatmul.msk.f32.gmra.mxu1 %vm262_vm2, %v38_v26 }
  0x55   :  { %1113 = vmatmul.msk.f32.gmra.mxu2 %vm262_vm2, %v38_v26  ;;  %1121 = vmatmul.msk.f32.gmra.mxu3 %vm262_vm2, %v38_v26 }
  0x5c   :  { %1098 = vmatmul.msk.f32.gmra.mxu0 %vm262_vm2, %v39_v28  ;;  %1106 = vmatmul.msk.f32.gmra.mxu1 %vm262_vm2, %v39_v28 }
  0x5d   :  { %1114 = vmatmul.msk.f32.gmra.mxu2 %vm262_vm2, %v39_v28  ;;  %1122 = vmatmul.msk.f32.gmra.mxu3 %vm262_vm2, %v39_v28 }
  0x64   :  { %1099 = vmatmul.msk.f32.gmra.mxu0 %vm262_vm2, %v40_v31  ;;  %1107 = vmatmul.msk.f32.gmra.mxu1 %vm262_vm2, %v40_v31 }
  0x65   :  { %1115 = vmatmul.msk.f32.gmra.mxu2 %vm262_vm2, %v40_v31  ;;  %1123 = vmatmul.msk.f32.gmra.mxu3 %vm262_vm2, %v40_v31 }
  0x6b   :  { %v1535_v39 = vpop.permute.xlu2 %476 }
  0x6c   :  { %1100 = vmatmul.msk.f32.gmra.mxu0 %vm262_vm2, %v41_v34  ;;  %1108 = vmatmul.msk.f32.gmra.mxu1 %vm262_vm2, %v41_v34 }
  0x6d   :  { %1116 = vmatmul.msk.f32.gmra.mxu2 %vm262_vm2, %v41_v34  ;;  %1124 = vmatmul.msk.f32.gmra.mxu3 %vm262_vm2, %v41_v34 }
  0x74   :  { %1101 = vmatmul.msk.f32.gmra.mxu0 %vm262_vm2, %v42_v37  ;;  %1109 = vmatmul.msk.f32.gmra.mxu1 %vm262_vm2, %v42_v37 }
  0x75   :  { %1117 = vmatmul.msk.f32.gmra.mxu2 %vm262_vm2, %v42_v37  ;;  %1125 = vmatmul.msk.f32.gmra.mxu3 %vm262_vm2, %v42_v37 }
  0x79   :  { %v1519_v27 = vpop.permute.xlu1 %486 }
  0x7a   :  { %v1525_v32 = vpop.permute.xlu0 %496 }
  0x7c   :  { %1102 = vmatmul.msk.f32.gmra.mxu0 %vm262_vm2, %v43_v40  ;;  %1110 = vmatmul.msk.f32.gmra.mxu1 %vm262_vm2, %v43_v40 }
  0x7d   :  { %1118 = vmatmul.msk.f32.gmra.mxu2 %vm262_vm2, %v43_v40  ;;  %1126 = vmatmul.msk.f32.gmra.mxu3 %vm262_vm2, %v43_v40 }
  0x82   :  { %v1531_v37 = vpop.permute.xlu1 %481  ;;  %v1533_v38 = vpop.permute.xlu0 %491 }
  0x84   :  { %1103 = vmatmul.msk.f32.gmra.mxu0 %vm262_vm2, %v44_v42  ;;  %1111 = vmatmul.msk.f32.gmra.mxu1 %vm262_vm2, %v44_v42 }
  0x85   :  { %1119 = vmatmul.msk.f32.gmra.mxu2 %vm262_vm2, %v44_v42  ;;  %1127 = vmatmul.msk.f32.gmra.mxu3 %vm262_vm2, %v44_v42 }
  0x89   :  { %v1452_v44 = vpop.f32.mrf.mxu0  ;;  %v1454_v45 = vpop.f32.mrf.mxu1 }
  0x90   :  { %v1456_v46 = vpop.f32.mrf.mxu2  ;;  %v1458_v47 = vpop.f32.mrf.mxu3 }
  0x91   :  { %1792 = vst [vmem:[#allocation5_spill] sm:$0xff] %v1456_v46  ;;  %v1463_v49 = vpop.f32.mrf.mxu0  ;;  %v1465_v50 = vpop.f32.mrf.mxu1 }
  0x92   :  { %1793 = vst [vmem:[#allocation6_spill] sm:$0xff] %v1458_v47  ;;  %v1539_v47 = vpop.permute.xlu1 %461 }
  0x98   :  { %v1467_v51 = vpop.f32.mrf.mxu2  ;;  %v1469_v52 = vpop.f32.mrf.mxu3 }
  0x99   :  { %1794 = vst [vmem:[#allocation7_spill] sm:$0xff] %v1467_v51  ;;  %v1471_v53 = vpop.f32.mrf.mxu0  ;;  %v1473_v54 = vpop.f32.mrf.mxu1 }
  0x9a   :  { %1795 = vst [vmem:[#allocation8_spill] sm:$0xff] %v1469_v52 }
  0xa0   :  { %v1475_v55 = vpop.f32.mrf.mxu2  ;;  %v1477_v56 = vpop.f32.mrf.mxu3 }
  0xa1   :  { %1796 = vst [vmem:[#allocation9_spill] sm:$0xff] %v1477_v56  ;;  %v1479_v57 = vpop.f32.mrf.mxu0  ;;  %v1481_v58 = vpop.f32.mrf.mxu1 }
  0xa8   :  { %v1483_v59 = vpop.f32.mrf.mxu2  ;;  %v1485_v60 = vpop.f32.mrf.mxu3 }
  0xa9   :  { %v1487_v61 = vpop.f32.mrf.mxu0  ;;  %v1489_v62 = vpop.f32.mrf.mxu1 }
  0xb0   :  { %v1491_v63 = vpop.f32.mrf.mxu2  ;;  %v1493_v0 = vpop.f32.mrf.mxu3 }
  0xb1   :  { %v130_v1 = vpop.f32.mrf.mxu0  ;;  %v171_v2 = vpop.f32.mrf.mxu1 }
  0xb8   :  { %v1495_v3 = vpop.f32.mrf.mxu2  ;;  %v1497_v4 = vpop.f32.mrf.mxu3 }
  0xb9   :  { %v133_v5 = vpop.f32.mrf.mxu0  ;;  %v174_v6 = vpop.f32.mrf.mxu1 }
  0xc0   :  { %v1499_v7 = vpop.f32.mrf.mxu2  ;;  %v1501_v8 = vpop.f32.mrf.mxu3 }
  0xc1   :  { %v136_v9 = vpop.f32.mrf.mxu0  ;;  %v177_v10 = vpop.f32.mrf.mxu1 }
  0xc8   :  { %v1503_v11 = vpop.f32.mrf.mxu2  ;;  %v1505_v12 = vpop.f32.mrf.mxu3 }
  0xc9   :  { %v304_v13 = vpop.f32.mrf.mxu0  ;;  %v345_v14 = vpop.f32.mrf.mxu1 }
  0xca   :  { %v305_v48 = vadd.f32 %v304_v13, %v1452_v44 }
  0xd0   :  { %v1507_v15 = vpop.f32.mrf.mxu2  ;;  %v1509_v16 = vpop.f32.mrf.mxu3 }
  0xd1   :  { %1797 = vst [vmem:[#allocation10_spill] sm:$0xff] %v1507_v15  ;;  %v307_v17 = vpop.f32.mrf.mxu0  ;;  %v348_v18 = vpop.f32.mrf.mxu1 }
  0xd2   :  { %1798 = vst [vmem:[#allocation11_spill] sm:$0xff] %v1509_v16  ;;  %v346_v16 = vadd.f32 %v345_v14, %v1454_v45  ;;  %v349_v56 = vadd.f32 %v348_v18, %v1465_v50 }
  0xd4   :  { %v1545_v51 = vadd.f32 %v1539_v47, %v346_v16 }
  0xd8   :  { %v1511_v19 = vpop.f32.mrf.mxu2  ;;  %v1513_v20 = vpop.f32.mrf.mxu3 }
  0xd9   :  { %1799 = vst [vmem:[#allocation12_spill] sm:$0xff] %v1511_v19  ;;  %v310_v21 = vpop.f32.mrf.mxu0  ;;  %v351_v22 = vpop.f32.mrf.mxu1  ;;  %v1542_v19 = vadd.f32 %v1539_v47, %v305_v48 }
  0xda   :  { %1800 = vst [vmem:[#allocation13_spill] sm:$0xff] %v1513_v20  ;;  %v311_v44 = vadd.f32 %v310_v21, %v1471_v53  ;;  %v352_v45 = vadd.f32 %v351_v22, %v1473_v54 }
  0xdb   :  { %1802 = vst [vmem:[#allocation15_spill] sm:$0xff] %v1542_v19 }
  0xe0   :  { %v1515_v23 = vpop.f32.mrf.mxu2  ;;  %v1517_v24 = vpop.f32.mrf.mxu3 }
  0xe1   :  { %1801 = vst [vmem:[#allocation14_spill] sm:$0xff] %v1517_v24  ;;  %v313_v25 = vpop.f32.mrf.mxu0  ;;  %v354_v26 = vpop.f32.mrf.mxu1  ;;  %v308_v24 = vadd.f32 %v307_v17, %v1463_v49 }
  0xe2   :  { %v314_v16 = vadd.f32 %v313_v25, %v1479_v57  ;;  %v355_v49 = vadd.f32 %v354_v26, %v1481_v58 }
  0xe8   :  { %v1521_v28 = vpop.f32.mrf.mxu2  ;;  %v1523_v29 = vpop.f32.mrf.mxu3 }
  0xe9   :  { %v316_v30 = vpop.f32.mrf.mxu0  ;;  %v357_v31 = vpop.f32.mrf.mxu1 }
  0xea   :  { %v317_v50 = vadd.f32 %v316_v30, %v1487_v61  ;;  %v358_v53 = vadd.f32 %v357_v31, %v1489_v62 }
  0xec   :  { %v516_v25 = vadd.f32 %v1531_v37, %v358_v53  ;;  %v1807_v53 = vld [vmem:[#allocation8_spill] sm:$0xff] }
  0xf0   :  { %v1527_v33 = vpop.f32.mrf.mxu2  ;;  %v1529_v34 = vpop.f32.mrf.mxu3 }
  0xf1   :  { %v319_v35 = vpop.f32.mrf.mxu0  ;;  %v360_v36 = vpop.f32.mrf.mxu1 }
  0xf8   :  { %v401_v40 = vpop.f32.mrf.mxu2  ;;  %v442_v41 = vpop.f32.mrf.mxu3 }
  0xf9   :  { %v322_v42 = vpop.f32.mrf.mxu0  ;;  %v363_v43 = vpop.f32.mrf.mxu1 }
  0xfa   :  { %v323_v15 = vadd.f32 %v322_v42, %v133_v5  ;;  %v364_v46 = vadd.f32 %v363_v43, %v174_v6  ;;  %v1551_v5 = vpop.permute.xlu0 %466  ;;  %v1553_v6 = vpop.permute.xlu2 %471  ;;  %v320_v42 = vadd.f32 %v319_v35, %v130_v1  ;;  %v361_v43 = vadd.f32 %v360_v36, %v171_v2 }
  0xfb   :  { %v1564_v1 = vadd.f32 %v1553_v6, %v311_v44  ;;  %v1567_v2 = vadd.f32 %v1553_v6, %v352_v45  ;;  %v1570_v57 = vadd.f32 %v1551_v5, %v308_v24  ;;  %v1573_v58 = vadd.f32 %v1551_v5, %v349_v56 }
  0xfc   :  { %v523_v54 = vadd.f32 %v1533_v38, %v323_v15  ;;  %v524_v17 = vadd.f32 %v1533_v38, %v364_v46  ;;  %v519_v61 = vadd.f32 %v1519_v27, %v320_v42  ;;  %v520_v46 = vadd.f32 %v1519_v27, %v361_v43  ;;  %v1804_v42 = vld [vmem:[#allocation14_spill] sm:$0xff] }
  0xfd   :  { %v512_v15 = vadd.f32 %v1535_v39, %v355_v49  ;;  %v515_v24 = vadd.f32 %v1531_v37, %v317_v50  ;;  %v402_v35 = vadd.f32 %v401_v40, %v1495_v3  ;;  %v443_v36 = vadd.f32 %v442_v41, %v1497_v4  ;;  %v1806_v49 = vld [vmem:[#allocation12_spill] sm:$0xff] }
  0xfe   :  { %v555_v56 = vmax.f32 %v523_v54, 0.0  ;;  %v556_v26 = vmax.f32 %v524_v17, 0.0  ;;  %v552_v45 = vmax.f32 %v520_v46, 0.0  ;;  %v539_v54 = vmax.f32 %v1564_v1, 0.0  ;;  %v1809_v46 = vld [vmem:[#allocation5_spill] sm:$0xff] }
  0xff   :  { %v522_v40 = vadd.f32 %v1519_v27, %v443_v36  ;;  %v540_v17 = vmax.f32 %v1567_v2, 0.0  ;;  %v535_v1 = vmax.f32 %v1570_v57, 0.0  ;;  %v536_v2 = vmax.f32 %v1573_v58, 0.0 }
 0x100   :  { %v404_v20 = vpop.f32.mrf.mxu2  ;;  %v445_v52 = vpop.f32.mrf.mxu3 }
 0x101   :  { %v325_v13 = vpop.f32.mrf.mxu0  ;;  %v366_v14 = vpop.f32.mrf.mxu1  ;;  %v446_v22 = vadd.f32 %v445_v52, %v1501_v8  ;;  %v399_v52 = vadd.f32 %v1527_v33, %v1491_v63  ;;  %v440_v8 = vadd.f32 %v1529_v34, %v1493_v0  ;;  %v437_v63 = vadd.f32 %v1523_v29, %v1485_v60 }
 0x102   :  { %v326_v48 = vadd.f32 %v325_v13, %v136_v9  ;;  %v367_v19 = vadd.f32 %v366_v14, %v177_v10  ;;  %v511_v10 = vadd.f32 %v1535_v39, %v314_v16  ;;  %v547_v33 = vmax.f32 %v515_v24, 0.0 }
 0x103   :  { %v526_v3 = vadd.f32 %v1533_v38, %v446_v22  ;;  %v548_v0 = vmax.f32 %v516_v25, 0.0  ;;  %v521_v34 = vadd.f32 %v1519_v27, %v402_v35  ;;  %v393_v14 = vadd.f32 %v1515_v23, %v1475_v55  ;;  %v1805_v27 = vld [vmem:[#allocation7_spill] sm:$0xff]  ;;  %v1808_v55 = vld [vmem:[#allocation13_spill] sm:$0xff] }
 0x104   :  { %v527_v18 = vadd.f32 %v1525_v32, %v326_v48  ;;  %v528_v21 = vadd.f32 %v1525_v32, %v367_v19  ;;  %v405_v19 = vadd.f32 %v404_v20, %v1499_v7  ;;  %v551_v20 = vmax.f32 %v519_v61, 0.0 }
 0x105   :  { %v517_v60 = vadd.f32 %v1531_v37, %v399_v52  ;;  %v518_v29 = vadd.f32 %v1531_v37, %v440_v8  ;;  %v558_v16 = vmax.f32 %v526_v3, 0.0  ;;  %v390_v50 = vadd.f32 %v1806_v49, %v1805_v27  ;;  %v567_v3 = vld [vmem:[%s1787_s5 + $0x20] sm:$0xff] }
 0x106   :  { %v559_v62 = vmax.f32 %v527_v18, 0.0  ;;  %v560_v9 = vmax.f32 %v528_v21, 0.0  ;;  %v525_v13 = vadd.f32 %v1533_v38, %v405_v19  ;;  %v431_v23 = vadd.f32 %v1808_v55, %v1807_v53 }
 0x107   :  { %v514_v37 = vadd.f32 %v1535_v39, %v437_v63  ;;  %v553_v21 = vmax.f32 %v521_v34, 0.0  ;;  %v554_v61 = vmax.f32 %v522_v40, 0.0  ;;  %v509_v22 = vadd.f32 %v1553_v6, %v393_v14 }
 0x108   :  { %v407_v30 = vpop.f32.mrf.mxu2  ;;  %v448_v31 = vpop.f32.mrf.mxu3  ;;  %652 = vmatpush.msra.mxu0 %v559_v62  ;;  %693 = vmatpush.msra.mxu1 %v560_v9  ;;  %v557_v48 = vmax.f32 %v525_v13, 0.0  ;;  %v1810_v62 = vld [vmem:[#allocation10_spill] sm:$0xff]  ;;  %v549_v24 = vmax.f32 %v517_v60, 0.0  ;;  %v550_v25 = vmax.f32 %v518_v29, 0.0  ;;  %v506_v57 = vadd.f32 %v1551_v5, %v431_v23  ;;  %v566_v13 = vld [vmem:[%s1787_s5 + $0x18] sm:$0xff] }
 0x109   :  { %v408_v44 = vadd.f32 %v407_v30, %v1503_v11  ;;  %v449_v7 = vadd.f32 %v448_v31, %v1505_v12  ;;  %v396_v12 = vadd.f32 %v1521_v28, %v1483_v59  ;;  %v543_v59 = vmax.f32 %v511_v10, 0.0  ;;  %v1811_v10 = vld [vmem:[#allocation6_spill] sm:$0xff]  ;;  %v617_v23 = vpop.permute.xlu2 %616 }
 0x10a   :  { %653 = vmatpush.msra.mxu0 %v555_v56  ;;  %694 = vmatpush.msra.mxu1 %v556_v26  ;;  %v544_v28 = vmax.f32 %v512_v15, 0.0  ;;  %v387_v9 = vadd.f32 %v1810_v62, %v1809_v46  ;;  %v1812_v15 = vld [vmem:[#allocation11_spill] sm:$0xff]  ;;  %v505_v56 = vadd.f32 %v1551_v5, %v390_v50  ;;  %v532_v31 = vmax.f32 %v1545_v51, 0.0 }
 0x10b   :  { %v529_v4 = vadd.f32 %v1525_v32, %v408_v44  ;;  %v530_v11 = vadd.f32 %v1525_v32, %v449_v7  ;;  %v1803_v32 = vld [vmem:[#allocation9_spill] sm:$0xff]  ;;  %v513_v18 = vadd.f32 %v1535_v39, %v396_v12  ;;  %v428_v19 = vadd.f32 %v1812_v15, %v1811_v10  ;;  %v1813_v26 = vld [vmem:[#allocation15_spill] sm:$0xff] }
 0x10c   :  { %654 = vmatpush.msra.mxu0 %v551_v20  ;;  %695 = vmatpush.msra.mxu1 %v552_v45  ;;  %v434_v43 = vadd.f32 %v1804_v42, %v1803_v32  ;;  %v531_v30 = vmax.f32 %v1813_v26, 0.0  ;;  %v546_v58 = vmax.f32 %v514_v37, 0.0  ;;  %v501_v36 = vadd.f32 %v1539_v47, %v387_v9  ;;  %v565_v45 = vld [vmem:[%s1787_s5 + $0x10] sm:$0xff]  ;;  %v570_v12 = vld [vmem:[%s1787_s5 + $0x38] sm:$0xff] }
 0x10d   :  { %v561_v41 = vmax.f32 %v529_v4, 0.0  ;;  %v562_v38 = vmax.f32 %v530_v11, 0.0  ;;  %v545_v35 = vmax.f32 %v513_v18, 0.0  ;;  %v502_v44 = vadd.f32 %v1539_v47, %v428_v19  ;;  %v564_v47 = vld [vmem:[%s1787_s5 + $0x8] sm:$0xff]  ;;  %v569_v11 = vld [vmem:[%s1787_s5 + $0x30] sm:$0xff] }
 0x10e   :  { %655 = vmatpush.msra.mxu0 %v547_v33  ;;  %696 = vmatpush.msra.mxu1 %v548_v0  ;;  %v510_v39 = vadd.f32 %v1553_v6, %v434_v43  ;;  %v563_v6 = vld [vmem:[%s1787_s5] sm:$0xff]  ;;  %v541_v7 = vmax.f32 %v509_v22, 0.0  ;;  %v537_v51 = vmax.f32 %v505_v56, 0.0  ;;  %v538_v5 = vmax.f32 %v506_v57, 0.0  ;;  %v568_v4 = vld [vmem:[%s1787_s5 + $0x28] sm:$0xff] }
 0x10f   :  { %734 = vmatpush.msra.mxu2 %v561_v41  ;;  %775 = vmatpush.msra.mxu3 %v562_v38  ;;  %v533_v8 = vmax.f32 %v501_v36, 0.0  ;;  %v534_v20 = vmax.f32 %v502_v44, 0.0 }
 0x110   :  { %656 = vmatpush.msra.mxu0 %v543_v59  ;;  %697 = vmatpush.msra.mxu1 %v544_v28  ;;  %v542_v52 = vmax.f32 %v510_v39, 0.0 }
 0x111   :  { %735 = vmatpush.msra.mxu2 %v557_v48  ;;  %776 = vmatpush.msra.mxu3 %v558_v16  ;;  %v1709_v46 = vpop.permute.xlu2 %601 }
 0x112   :  { %657 = vmatpush.msra.mxu0 %v539_v54  ;;  %698 = vmatpush.msra.mxu1 %v540_v17  ;;  %v612_v54 = vpop.permute.xlu0 %611 }
 0x113   :  { %736 = vmatpush.msra.mxu2 %v553_v21  ;;  %777 = vmatpush.msra.mxu3 %v554_v61  ;;  %v607_v61 = vpop.permute.xlu1 %606 }
 0x114   :  { %658 = vmatpush.msra.mxu0 %v535_v1  ;;  %699 = vmatpush.msra.mxu1 %v536_v2 }
 0x115   :  { %737 = vmatpush.msra.mxu2 %v549_v24  ;;  %778 = vmatpush.msra.mxu3 %v550_v25 }
 0x116   :  { %659 = vmatpush.msra.mxu0 %v531_v30  ;;  %700 = vmatpush.msra.mxu1 %v532_v31 }
 0x117   :  { %738 = vmatpush.msra.mxu2 %v545_v35  ;;  %779 = vmatpush.msra.mxu3 %v546_v58 }
 0x118   :  { %1128 = vmatmul.msk.f32.vlgmr.msra.gmra.mxu0 %vm619_vm3, %v563_v6  ;;  %1136 = vmatmul.msk.f32.vlgmr.msra.gmra.mxu1 %vm619_vm3, %v563_v6 }
 0x119   :  { %739 = vmatpush.msra.mxu2 %v541_v7  ;;  %780 = vmatpush.msra.mxu3 %v542_v52 }
 0x11a   :  { %v1711_v10 = vpop.permute.xlu0 %596 }
 0x11b   :  { %740 = vmatpush.msra.mxu2 %v537_v51  ;;  %781 = vmatpush.msra.mxu3 %v538_v5  ;;  %v592_v7 = vpop.permute.xlu1 %591 }
 0x11d   :  { %741 = vmatpush.msra.mxu2 %v533_v8  ;;  %782 = vmatpush.msra.mxu3 %v534_v20  ;;  %v587_v20 = vpop.permute.xlu2 %586 }
 0x11e   :  { %1144 = vmatmul.msk.f32.vlgmr.msra.gmra.mxu2 %vm619_vm3, %v563_v6  ;;  %1152 = vmatmul.msk.f32.vlgmr.msra.gmra.mxu3 %vm619_vm3, %v563_v6 }
 0x120   :  { %1129 = vmatmul.msk.f32.gmra.mxu0 %vm619_vm3, %v564_v47  ;;  %1137 = vmatmul.msk.f32.gmra.mxu1 %vm619_vm3, %v564_v47 }
 0x126   :  { %1145 = vmatmul.msk.f32.gmra.mxu2 %vm619_vm3, %v564_v47  ;;  %1153 = vmatmul.msk.f32.gmra.mxu3 %vm619_vm3, %v564_v47  ;;  %v582_v47 = vpop.permute.xlu0 %581 }
 0x128   :  { %1130 = vmatmul.msk.f32.gmra.mxu0 %vm619_vm3, %v565_v45  ;;  %1138 = vmatmul.msk.f32.gmra.mxu1 %vm619_vm3, %v565_v45 }
 0x12e   :  { %1146 = vmatmul.msk.f32.gmra.mxu2 %vm619_vm3, %v565_v45  ;;  %1154 = vmatmul.msk.f32.gmra.mxu3 %vm619_vm3, %v565_v45 }
 0x130   :  { %1131 = vmatmul.msk.f32.gmra.mxu0 %vm619_vm3, %v566_v13  ;;  %1139 = vmatmul.msk.f32.gmra.mxu1 %vm619_vm3, %v566_v13 }
 0x136   :  { %1147 = vmatmul.msk.f32.gmra.mxu2 %vm619_vm3, %v566_v13  ;;  %1155 = vmatmul.msk.f32.gmra.mxu3 %vm619_vm3, %v566_v13 }
 0x138   :  { %1132 = vmatmul.msk.f32.gmra.mxu0 %vm619_vm3, %v567_v3  ;;  %1140 = vmatmul.msk.f32.gmra.mxu1 %vm619_vm3, %v567_v3 }
 0x13e   :  { %1148 = vmatmul.msk.f32.gmra.mxu2 %vm619_vm3, %v567_v3  ;;  %1156 = vmatmul.msk.f32.gmra.mxu3 %vm619_vm3, %v567_v3 }
 0x140   :  { %1133 = vmatmul.msk.f32.gmra.mxu0 %vm619_vm3, %v568_v4  ;;  %1141 = vmatmul.msk.f32.gmra.mxu1 %vm619_vm3, %v568_v4 }
 0x146   :  { %1149 = vmatmul.msk.f32.gmra.mxu2 %vm619_vm3, %v568_v4  ;;  %1157 = vmatmul.msk.f32.gmra.mxu3 %vm619_vm3, %v568_v4 }
 0x148   :  { %1134 = vmatmul.msk.f32.gmra.mxu0 %vm619_vm3, %v569_v11  ;;  %1142 = vmatmul.msk.f32.gmra.mxu1 %vm619_vm3, %v569_v11 }
 0x14e   :  { %1150 = vmatmul.msk.f32.gmra.mxu2 %vm619_vm3, %v569_v11  ;;  %1158 = vmatmul.msk.f32.gmra.mxu3 %vm619_vm3, %v569_v11 }
 0x150   :  { %1135 = vmatmul.msk.f32.gmra.mxu0 %vm619_vm3, %v570_v12  ;;  %1143 = vmatmul.msk.f32.gmra.mxu1 %vm619_vm3, %v570_v12 }
 0x156   :  { %1151 = vmatmul.msk.f32.gmra.mxu2 %vm619_vm3, %v570_v12  ;;  %1159 = vmatmul.msk.f32.gmra.mxu3 %vm619_vm3, %v570_v12 }
 0x195   :  { %v1685_v63 = vpop.f32.mrf.mxu0  ;;  %v1687_v33 = vpop.f32.mrf.mxu1 }
 0x196   :  { %v662_v11 = vadd.f32 %v1685_v63, %v582_v47  ;;  %v703_v12 = vadd.f32 %v1687_v33, %v582_v47 }
 0x198   :  { %v809_v33 = vmax.f32 %v703_v12, 0.0 }
 0x19d   :  { %v664_v0 = vpop.f32.mrf.mxu0  ;;  %v705_v34 = vpop.f32.mrf.mxu1 }
 0x19e   :  { %v665_v45 = vadd.f32 %v664_v0, %v587_v20  ;;  %v706_v13 = vadd.f32 %v705_v34, %v587_v20 }
 0x1a0   :  { %v812_v0 = vmax.f32 %v665_v45, 0.0  ;;  %v813_v34 = vmax.f32 %v706_v13, 0.0 }
 0x1a1   :  { %v1689_v40 = vpop.f32.mrf.mxu2  ;;  %v1691_v41 = vpop.f32.mrf.mxu3 }
 0x1a5   :  { %v667_v38 = vpop.f32.mrf.mxu0  ;;  %v708_v14 = vpop.f32.mrf.mxu1 }
 0x1a6   :  { %v668_v52 = vadd.f32 %v667_v38, %v592_v7  ;;  %v709_v51 = vadd.f32 %v708_v14, %v592_v7 }
 0x1a8   :  { %v816_v38 = vmax.f32 %v668_v52, 0.0  ;;  %v817_v14 = vmax.f32 %v709_v51, 0.0 }
 0x1a9   :  { %v1693_v32 = vpop.f32.mrf.mxu2  ;;  %v1695_v42 = vpop.f32.mrf.mxu3 }
 0x1ad   :  { %v670_v43 = vpop.f32.mrf.mxu0  ;;  %v711_v59 = vpop.f32.mrf.mxu1 }
 0x1ae   :  { %v671_v58 = vadd.f32 %v670_v43, %v1711_v10  ;;  %v712_v6 = vadd.f32 %v711_v59, %v1711_v10 }
 0x1b0   :  { %v820_v3 = vmax.f32 %v671_v58, 0.0  ;;  %v821_v4 = vmax.f32 %v712_v6, 0.0 }
 0x1b1   :  { %v1697_v28 = vpop.f32.mrf.mxu2  ;;  %v1699_v60 = vpop.f32.mrf.mxu3 }
 0x1b5   :  { %v673_v29 = vpop.f32.mrf.mxu0  ;;  %v714_v48 = vpop.f32.mrf.mxu1 }
 0x1b6   :  { %v674_v30 = vadd.f32 %v673_v29, %v1709_v46  ;;  %v715_v31 = vadd.f32 %v714_v48, %v1709_v46 }
 0x1b8   :  { %v824_v5 = vmax.f32 %v674_v30, 0.0  ;;  %v825_v8 = vmax.f32 %v715_v31, 0.0  ;;  %v852_v31 = vpop.permute.xlu1 %851 }
 0x1b9   :  { %v1701_v16 = vpop.f32.mrf.mxu2  ;;  %v1703_v27 = vpop.f32.mrf.mxu3 }
 0x1bd   :  { %v676_v49 = vpop.f32.mrf.mxu0  ;;  %v717_v50 = vpop.f32.mrf.mxu1 }
 0x1be   :  { %v677_v22 = vadd.f32 %v676_v49, %v607_v61  ;;  %v718_v39 = vadd.f32 %v717_v50, %v607_v61 }
 0x1c0   :  { %v828_v36 = vmax.f32 %v677_v22, 0.0  ;;  %v829_v44 = vmax.f32 %v718_v39, 0.0 }
 0x1c1   :  { %v1705_v53 = vpop.f32.mrf.mxu2  ;;  %v1707_v55 = vpop.f32.mrf.mxu3 }
 0x1c5   :  { %v679_v17 = vpop.f32.mrf.mxu0  ;;  %v720_v18 = vpop.f32.mrf.mxu1 }
 0x1c6   :  { %v680_v15 = vadd.f32 %v679_v17, %v612_v54  ;;  %v721_v19 = vadd.f32 %v720_v18, %v612_v54 }
 0x1c8   :  { %v832_v57 = vmax.f32 %v680_v15, 0.0  ;;  %v833_v35 = vmax.f32 %v721_v19, 0.0  ;;  %v756_v15 = vadd.f32 %v1705_v53, %v1709_v46 }
 0x1c9   :  { %v758_v37 = vpop.f32.mrf.mxu2  ;;  %v799_v21 = vpop.f32.mrf.mxu3 }
 0x1ca   :  { %v800_v63 = vadd.f32 %v799_v21, %v607_v61  ;;  %v794_v21 = vadd.f32 %v1703_v27, %v1711_v10  ;;  %v788_v27 = vadd.f32 %v1695_v42, %v587_v20 }
 0x1cc   :  { %v823_v39 = vmax.f32 %v794_v21, 0.0 }
 0x1cd   :  { %v682_v62 = vpop.f32.mrf.mxu0  ;;  %v723_v9 = vpop.f32.mrf.mxu1 }
 0x1ce   :  { %v683_v1 = vadd.f32 %v682_v62, %v617_v23  ;;  %v724_v2 = vadd.f32 %v723_v9, %v617_v23  ;;  %v759_v62 = vadd.f32 %v758_v37, %v607_v61  ;;  %v808_v9 = vmax.f32 %v662_v11, 0.0 }
 0x1cf   :  { %v753_v37 = vadd.f32 %v1701_v16, %v1711_v10  ;;  %v831_v61 = vmax.f32 %v800_v63, 0.0  ;;  %v747_v16 = vadd.f32 %v1693_v32, %v587_v20  ;;  %v815_v32 = vmax.f32 %v788_v27, 0.0  ;;  %v847_v27 = vpop.permute.xlu2 %846 }
 0x1d0   :  { %v836_v24 = vmax.f32 %v683_v1, 0.0  ;;  %v837_v25 = vmax.f32 %v724_v2, 0.0  ;;  %v840_v1 = vld [vmem:[%s1789_s7] sm:$0xff]  ;;  %v830_v53 = vmax.f32 %v759_v62, 0.0  ;;  %v826_v2 = vmax.f32 %v756_v15, 0.0 }
 0x1d1   :  { %v761_v56 = vpop.f32.mrf.mxu2  ;;  %v802_v26 = vpop.f32.mrf.mxu3  ;;  %v822_v10 = vmax.f32 %v753_v37, 0.0 }
 0x1d2   :  { %868 = vmatpush.msrb.mxu0 %v836_v24  ;;  %891 = vmatpush.msrb.mxu1 %v837_v25  ;;  %v762_v49 = vadd.f32 %v761_v56, %v612_v54  ;;  %v803_v50 = vadd.f32 %v802_v26, %v612_v54  ;;  %v744_v24 = vadd.f32 %v1689_v40, %v582_v47  ;;  %v814_v26 = vmax.f32 %v747_v16, 0.0 }
 0x1d3   :  { %v785_v25 = vadd.f32 %v1691_v41, %v582_v47 }
 0x1d4   :  { %869 = vmatpush.msrb.mxu0 %v832_v57  ;;  %892 = vmatpush.msrb.mxu1 %v833_v35  ;;  %v834_v19 = vmax.f32 %v762_v49, 0.0  ;;  %v835_v54 = vmax.f32 %v803_v50, 0.0  ;;  %v810_v42 = vmax.f32 %v744_v24, 0.0 }
 0x1d5   :  { %v811_v40 = vmax.f32 %v785_v25, 0.0 }
 0x1d6   :  { %870 = vmatpush.msrb.mxu0 %v828_v36  ;;  %893 = vmatpush.msrb.mxu1 %v829_v44 }
 0x1d8   :  { %871 = vmatpush.msrb.mxu0 %v824_v5  ;;  %894 = vmatpush.msrb.mxu1 %v825_v8 }
 0x1d9   :  { %v764_v43 = vpop.f32.mrf.mxu2  ;;  %v805_v59 = vpop.f32.mrf.mxu3 }
 0x1da   :  { %v765_v29 = vadd.f32 %v764_v43, %v617_v23  ;;  %v806_v48 = vadd.f32 %v805_v59, %v617_v23  ;;  %872 = vmatpush.msrb.mxu0 %v820_v3  ;;  %895 = vmatpush.msrb.mxu1 %v821_v4  ;;  %v797_v23 = vadd.f32 %v1707_v55, %v1709_v46 }
 0x1db   :  { %v750_v55 = vadd.f32 %v1697_v28, %v592_v7  ;;  %v791_v46 = vadd.f32 %v1699_v60, %v592_v7  ;;  %v841_v60 = vld [vmem:[%s1789_s7 + $0x8] sm:$0xff] }
 0x1dc   :  { %v838_v17 = vmax.f32 %v765_v29, 0.0  ;;  %v839_v18 = vmax.f32 %v806_v48, 0.0  ;;  %873 = vmatpush.msrb.mxu0 %v816_v38  ;;  %896 = vmatpush.msrb.mxu1 %v817_v14  ;;  %v827_v22 = vmax.f32 %v797_v23, 0.0 }
 0x1dd   :  { %v818_v56 = vmax.f32 %v750_v55, 0.0  ;;  %v819_v28 = vmax.f32 %v791_v46, 0.0 }
 0x1de   :  { %874 = vmatpush.msrb.mxu0 %v812_v0  ;;  %897 = vmatpush.msrb.mxu1 %v813_v34 }
 0x1df   :  { %914 = vmatpush.msrb.mxu2 %v838_v17  ;;  %937 = vmatpush.msrb.mxu3 %v839_v18 }
 0x1e0   :  { %875 = vmatpush.msrb.mxu0 %v808_v9  ;;  %898 = vmatpush.msrb.mxu1 %v809_v33 }
 0x1e1   :  { %915 = vmatpush.msrb.mxu2 %v834_v19  ;;  %938 = vmatpush.msrb.mxu3 %v835_v54 }
 0x1e2   :  { %1160 = vmatmul.msk.f32.vlgmr.msrb.gmra.mxu0 %vm619_vm3, %v840_v1  ;;  %1162 = vmatmul.msk.f32.vlgmr.msrb.gmra.mxu1 %vm619_vm3, %v840_v1 }
 0x1e3   :  { %916 = vmatpush.msrb.mxu2 %v830_v53  ;;  %939 = vmatpush.msrb.mxu3 %v831_v61 }
 0x1e5   :  { %917 = vmatpush.msrb.mxu2 %v826_v2  ;;  %940 = vmatpush.msrb.mxu3 %v827_v22 }
 0x1e7   :  { %918 = vmatpush.msrb.mxu2 %v822_v10  ;;  %941 = vmatpush.msrb.mxu3 %v823_v39 }
 0x1e9   :  { %919 = vmatpush.msrb.mxu2 %v818_v56  ;;  %942 = vmatpush.msrb.mxu3 %v819_v28 }
 0x1ea   :  { %1161 = vmatmul.msk.f32.gmra.mxu0 %vm619_vm3, %v841_v60  ;;  %1163 = vmatmul.msk.f32.gmra.mxu1 %vm619_vm3, %v841_v60 }
 0x1eb   :  { %920 = vmatpush.msrb.mxu2 %v814_v26  ;;  %943 = vmatpush.msrb.mxu3 %v815_v32 }
 0x1ed   :  { %921 = vmatpush.msrb.mxu2 %v810_v42  ;;  %944 = vmatpush.msrb.mxu3 %v811_v40 }
 0x1ee   :  { %1164 = vmatmul.msk.f32.vlgmr.msrb.gmra.mxu2 %vm619_vm3, %v840_v1  ;;  %1166 = vmatmul.msk.f32.vlgmr.msrb.gmra.mxu3 %vm619_vm3, %v840_v1 }
 0x1f6   :  { %1165 = vmatmul.msk.f32.gmra.mxu2 %vm619_vm3, %v841_v60  ;;  %1167 = vmatmul.msk.f32.gmra.mxu3 %vm619_vm3, %v841_v60  ;;  %v1189_v60 = vld [vmem:[%s1782_s0] sm:$0xff] }
 0x25f   :  { %v1747_v41 = vpop.f32.mrf.mxu0  ;;  %v1749_v30 = vpop.f32.mrf.mxu1 }
 0x260   :  { %v878_v24 = vadd.f32 %v1747_v41, %v847_v27  ;;  %v901_v25 = vadd.f32 %v1749_v30, %v847_v27 }
 0x267   :  { %v880_v57 = vpop.f32.mrf.mxu0  ;;  %v903_v35 = vpop.f32.mrf.mxu1 }
 0x268   :  { %v881_v58 = vadd.f32 %v880_v57, %v852_v31  ;;  %v904_v6 = vadd.f32 %v903_v35, %v852_v31 }
 0x26a   :  { %v952_v36 = vmul.f32 -0.14476483, %v881_v58  ;;  %v953_v44 = vmul.f32 -0.14476483, %v904_v6 }
 0x26c   :  { %v956_v7 = vand.u32 2147483647, %v952_v36  ;;  %v957_v52 = vand.u32 2147483647, %v953_v44 }
 0x26e   :  { %v960_v51 = vadd.f32 1.0, %v956_v7  ;;  %v961_v5 = vadd.f32 1.0, %v957_v52 }
 0x270   :  { %1173 = vrcp.f32 %v960_v51  ;;  %v973_v11 = vand.u32 2147483647, %v960_v51  ;;  %v975_v59 = vand.u32 2147483648, %v960_v51  ;;  %v988_v49 = vand.u32 2147483647, %v961_v5 }
 0x271   :  { %1175 = vrcp.f32 %v961_v5  ;;  %v1751_v8 = vpop.f32.mrf.mxu2  ;;  %v1753_v20 = vpop.f32.mrf.mxu3  ;;  %v990_v50 = vand.u32 2147483648, %v961_v5  ;;  %vm969_vm6 = vweird.f32 %v960_v51  ;;  %vm984_vm7 = vweird.f32 %v961_v5 }
 0x272   :  { %v976_v62 = vor.u32 1.1754944e-38, %v975_v59  ;;  %vm974_vm9 = vcmp.eq.f32.partialorder %v973_v11, 8.507059e+37  ;;  %vm989_vm11 = vcmp.eq.f32.partialorder %v988_v49, 8.507059e+37 }
 0x273   :  { %v991_v23 = vor.u32 1.1754944e-38, %v990_v50 }
 0x276   :  { %v1174_v47 = vpop.eup %1173 }
 0x277   :  { %v1176_v45 = vpop.eup %1175  ;;  %v965_v13 = vmul.f32 %v1174_v47, %v960_v51  ;;  %vm970_vm4 = vweird.f32 %v1174_v47 }
 0x278   :  { %v980_v3 = vmul.f32 %v1176_v45, %v961_v5  ;;  %vm985_vm5 = vweird.f32 %v1176_v45  ;;  %vm971_vm8 = vmor %vm969_vm6, %vm970_vm4 }
 0x279   :  { %v966_v4 = vsub.f32 1.0, %v965_v13  ;;  %v926_v12 = vpop.f32.mrf.mxu2  ;;  %v949_v43 = vpop.f32.mrf.mxu3  ;;  %vm986_vm10 = vmor %vm984_vm7, %vm985_vm5 }
 0x27a   :  { %v981_v38 = vsub.f32 1.0, %v980_v3  ;;  %v1755_v14 = vadd.f32 %v926_v12, %v852_v31  ;;  %v1757_v29 = vadd.f32 %v949_v43, %v852_v31  ;;  %v1190_v31 = vld [vmem:[%s1782_s0 + $0x8] sm:$0xff] }
 0x27b   :  { %v967_v48 = vmul.f32 %v1174_v47, %v966_v4 }
 0x27c   :  { %v982_v0 = vmul.f32 %v1176_v45, %v981_v38  ;;  %v954_v34 = vmul.f32 -0.14476483, %v1755_v14  ;;  %v955_v17 = vmul.f32 -0.14476483, %v1757_v29  ;;  %v924_v38 = vadd.f32 %v1751_v8, %v847_v27 }
 0x27d   :  { %v968_v18 = vadd.f32 %v1174_v47, %v967_v48  ;;  %v1191_v48 = vld [vmem:[%s1782_s0 + $0x10] sm:$0xff] }
 0x27e   :  { %v983_v63 = vadd.f32 %v1176_v45, %v982_v0  ;;  %v958_v9 = vand.u32 2147483647, %v954_v34  ;;  %v959_v33 = vand.u32 2147483647, %v955_v17 }
 0x27f   :  { %v972_v15 = vsel %vm971_vm8, %v1174_v47, %v968_v18 }
 0x280   :  { %v977_v19 = vsel %vm974_vm9, %v976_v62, %v972_v15  ;;  %v987_v54 = vsel %vm986_vm10, %v1176_v45, %v983_v63  ;;  %v962_v1 = vadd.f32 1.0, %v958_v9  ;;  %v963_v37 = vadd.f32 1.0, %v959_v33 }
 0x281   :  { %v978_v21 = vmul.f32 %v977_v19, %v881_v58  ;;  %v992_v53 = vsel %vm989_vm11, %v991_v23, %v987_v54 }
 0x282   :  { %v993_v61 = vmul.f32 %v992_v53, %v904_v6  ;;  %1177 = vrcp.f32 %v962_v1  ;;  %v1003_v32 = vand.u32 2147483647, %v962_v1  ;;  %v1005_v42 = vand.u32 2147483648, %v962_v1 }
 0x283   :  { %v1024_v55 = vmul.f32 1.442695, %v978_v21  ;;  %1179 = vrcp.f32 %v963_v37  ;;  %v1020_v41 = vand.u32 2147483648, %v963_v37  ;;  %v1018_v30 = vand.u32 2147483647, %v963_v37 }
 0x284   :  { %v1026_v46 = vmul.f32 1.442695, %v993_v61  ;;  %vm999_vm14 = vweird.f32 %v962_v1  ;;  %v1006_v7 = vor.u32 1.1754944e-38, %v1005_v42  ;;  %vm1014_vm0 = vweird.f32 %v963_v37 }
 0x285   :  { %1181 = vpow2.f32 %v1024_v55  ;;  %vm1004_vm1 = vcmp.eq.f32.partialorder %v1003_v32, 8.507059e+37  ;;  %v1021_v5 = vor.u32 1.1754944e-38, %v1020_v41  ;;  %vm1019_vm3 = vcmp.eq.f32.partialorder %v1018_v30, 8.507059e+37 }
 0x286   :  { %1183 = vpow2.f32 %v1026_v46 }
 0x288   :  { %v1178_v2 = vpop.eup %1177 }
 0x289   :  { %v1180_v22 = vpop.eup %1179  ;;  %v995_v16 = vmul.f32 %v1178_v2, %v962_v1  ;;  %vm1000_vm12 = vweird.f32 %v1178_v2 }
 0x28a   :  { %v1010_v10 = vmul.f32 %v1180_v22, %v963_v37  ;;  %vm1015_vm13 = vweird.f32 %v1180_v22  ;;  %vm1001_vm15 = vmor %vm999_vm14, %vm1000_vm12 }
 0x28b   :  { %v1182_v39 = vpop.eup %1181  ;;  %v996_v56 = vsub.f32 1.0, %v995_v16  ;;  %vm1016_vm2 = vmor %vm1014_vm0, %vm1015_vm13 }
 0x28c   :  { %v1184_v28 = vpop.eup %1183  ;;  %v1032_v26 = vmul.f32 %v1189_v60, %v1182_v39  ;;  %v1011_v40 = vsub.f32 1.0, %v1010_v10 }
 0x28d   :  { %v1033_v57 = vmul.f32 %v1190_v31, %v1184_v28  ;;  %v997_v35 = vmul.f32 %v1178_v2, %v996_v56 }
 0x28e   :  { %v1012_v58 = vmul.f32 %v1180_v22, %v1011_v40  ;;  %v1036_v6 = vadd.f32 %v1032_v26, %v878_v24 }
 0x28f   :  { %v998_v36 = vadd.f32 %v1178_v2, %v997_v35  ;;  %v1037_v44 = vadd.f32 %v1033_v57, %v901_v25 }
 0x290   :  { %v1013_v52 = vadd.f32 %v1180_v22, %v1012_v58  ;;  %1040 = vst [vmem:[#allocation2] sm:$0xff] %v1036_v6 }
 0x291   :  { %v1002_v51 = vsel %vm1001_vm15, %v1178_v2, %v998_v36  ;;  %1041 = vst [vmem:[#allocation2 + $0x8] sm:$0xff] %v1037_v44 }
 0x292   :  { %v1007_v47 = vsel %vm1004_vm1, %v1006_v7, %v1002_v51  ;;  %v1017_v45 = vsel %vm1016_vm2, %v1180_v22, %v1013_v52 }
 0x293   :  { %v1008_v13 = vmul.f32 %v1007_v47, %v1755_v14  ;;  %v1022_v3 = vsel %vm1019_vm3, %v1021_v5, %v1017_v45  ;;  %v947_v14 = vadd.f32 %v1753_v20, %v847_v27 }
 0x294   :  { %v1023_v4 = vmul.f32 %v1022_v3, %v1757_v29  ;;  %v1192_v29 = vld [vmem:[%s1782_s0 + $0x18] sm:$0xff] }
 0x295   :  { %v1028_v11 = vmul.f32 1.442695, %v1008_v13 }
 0x296   :  { %v1030_v12 = vmul.f32 1.442695, %v1023_v4 }
 0x297   :  { %1185 = vpow2.f32 %v1028_v11 }
 0x298   :  { %1187 = vpow2.f32 %v1030_v12 }
 0x29d   :  { %v1186_v43 = vpop.eup %1185 }
 0x29e   :  { %v1188_v59 = vpop.eup %1187  ;;  %v1034_v49 = vmul.f32 %v1191_v48, %v1186_v43 }
 0x29f   :  { %v1035_v50 = vmul.f32 %v1192_v29, %v1188_v59 }
 0x2a0   :  { %v1038_v0 = vadd.f32 %v1034_v49, %v924_v38 }
 0x2a1   :  { %v1039_v8 = vadd.f32 %v1035_v50, %v947_v14 }
 0x2a2   :  { %1042 = vst [vmem:[#allocation2 + $0x10] sm:$0xff] %v1038_v0 }
 0x2a3   :  { %1043 = vst [vmem:[#allocation2 + $0x18] sm:$0xff] %v1039_v8 }
 0x2a4   :  { %1054 = dma.vmem_to_hbm [thread:$0]  %s1050_s2, 512, %s1052_s8, [#allocation3]  }
 0x2a5   :  { %1217 = dma.done.wait [#allocation3], 512  }
 0x2a6   :  { %1218 = vsyncadd [#allocation3], 4294966784 }
 0x2a7   :  { %1059 = vsyncpa [#allocation3], 1 }

</bundles_post_ra>
